<compile_context>
chip_gen: v7x
topology: tpu7x:2x2x1
jax: 0.10.0
libtpu: 0.0.40
codegen_flags: <defaults>
</compile_context>

<pallas_src>
import jax
import jax.numpy as jnp
from jax.experimental import pallas as pl
from jax.experimental.pallas import tpu as pltpu


def _sigmoid(x):
    # tanh formulation: lands on the EUP slot, avoids the VALU divide of 1/(1+e^-x)
    return 0.5 * (jnp.tanh(0.5 * x) + 1.0)


def make_stsgcl_kernel(N, V, B, H, WPG, gcn_num):
    """One grid step = WPG temporal windows x all batches, fully fused."""
    Hc = WPG * H                 # lane width of the window-concatenated hidden state
    K = gcn_num - 1

    def kernel(x_ref, a_ref, amid_ref, w0_ref, b0_ref, wk_ref, bk_ref, out_ref):
        A = a_ref[...]           # (B*V, B*V) block-diagonal adjacency (kron(I_B, A))
        Am = amid_ref[...]       # (B*N, B*V) middle-node rows of A_bd (last layer)
        x = x_ref[...]           # (B*V, WPG*C) windows fused along lanes

        def glu(adj, xin, W, bvec):
            # nconv: adjacency matmul over rows (all batches / windows at once)
            ax = jnp.dot(adj, xin, preferred_element_type=jnp.float32)
            # fused 1x1 conv: one matmul produces [value | gate] for every window
            z = jnp.dot(ax, W, preferred_element_type=jnp.float32) + bvec
            return z[:, :Hc] * _sigmoid(z[:, Hc:])          # GLU, (rows, Hc)

        def mid_rows(h):
            # middle-time-step nodes of each batch block: (B*V, Hc) -> (B*N, Hc)
            return jnp.concatenate(
                [h[b * V + N:b * V + 2 * N, :] for b in range(B)], axis=0)

        if gcn_num == 1:
            acc = glu(Am, x, w0_ref[...], b0_ref[...])
        else:
            # layer 0 (c_in = input_features_num), full rows (feeds layer 1)
            h = glu(A, x, w0_ref[...], b0_ref[...])
            acc = mid_rows(h)
            # intermediate layers (c_in = H), full rows, statically unrolled
            for j in range(K - 1):
                h = glu(A, h, wk_ref[j], bk_ref[j])
                acc = jnp.maximum(acc, mid_rows(h))
            # last layer: only the output rows are needed (max commutes w/ slice)
            acc = jnp.maximum(acc, glu(Am, h, wk_ref[K - 1], bk_ref[K - 1]))

        out_ref[...] = acc.astype(out_ref.dtype)             # one full-block store

    return kernel


def prepare_stsgcl_params(A, W0, b0, Wk, bk, B, WPG):
    """Host-side prep, done once per model (not per forward call)."""
    TW = W0.shape[0]
    C = W0.shape[2]
    H = W0.shape[1] // 2
    K = Wk.shape[1]
    V = A.shape[0]
    N = V // 3
    GW = TW // WPG
    Hc = WPG * H

    # block-diagonal adjacency (fuses batch into matmul rows) + its middle rows
    A_bd = jax.scipy.linalg.block_diag(*([A] * B))                     # (B*V, B*V)
    A_mid = jnp.concatenate(
        [A_bd[b * V + N:b * V + 2 * N, :] for b in range(B)], axis=0)  # (B*N, B*V)

    # window- and value/gate-fused 1x1-conv weights:
    #   rows: window-block-diagonal over the input lanes
    #   cols: [0, Hc) value halves, [Hc, 2*Hc) gate halves
    K_eff = max(K, 1)
    W0_bd = jnp.zeros((GW, WPG * C, 2 * Hc), jnp.float32)
    b0_bd = jnp.zeros((GW, 1, 2 * Hc), jnp.float32)
    Wk_bd = jnp.zeros((GW, K_eff, Hc, 2 * Hc), jnp.float32)
    bk_bd = jnp.zeros((GW, K_eff, 1, 2 * Hc), jnp.float32)
    for g in range(GW):
        for w in range(WPG):
            i = g * WPG + w
            rs0 = slice(w * C, (w + 1) * C)
            cv = slice(w * H, (w + 1) * H)
            cg = slice(Hc + w * H, Hc + (w + 1) * H)
            W0_bd = W0_bd.at[g, rs0, cv].set(W0[i, :H, :].T)
            W0_bd = W0_bd.at[g, rs0, cg].set(W0[i, H:, :].T)
            b0_bd = b0_bd.at[g, 0, cv].set(b0[i, :H])
            b0_bd = b0_bd.at[g, 0, cg].set(b0[i, H:])
            rsk = slice(w * H, (w + 1) * H)
            for j in range(K):
                Wk_bd = Wk_bd.at[g, j, rsk, cv].set(Wk[i, j, :H, :].T)
                Wk_bd = Wk_bd.at[g, j, rsk, cg].set(Wk[i, j, H:, :].T)
                bk_bd = bk_bd.at[g, j, 0, cv].set(bk[i, j, :H])
                bk_bd = bk_bd.at[g, j, 0, cg].set(bk[i, j, H:])

    return dict(A_bd=A_bd, A_mid=A_mid, W0=W0_bd, b0=b0_bd, Wk=Wk_bd, bk=bk_bd)


def stsgcl_forward(x, temporal_emb, spatial_emb, params, gcn_num, WPG):
    """x: (B, T, N, C) f32. Returns (B, T-2, N, H)."""
    B, T, N, C = x.shape
    V = 3 * N
    BV = B * V
    TW = T - 2
    GW = TW // WPG
    Hc = params["W0"].shape[2] // 2
    H = Hc // WPG
    K_eff = params["Wk"].shape[1]

    # --- glue: embeddings + overlapping temporal windows (tiny, host side) ---
    data = x + temporal_emb + spatial_emb
    # window i: (B, 3, N, C) -> (B*V, C) batch-major rows (matches kron(I_B, A));
    # the WPG windows of a grid step are concatenated along lanes.
    wins = [data[:, i:i + 3, :, :].reshape(BV, C) for i in range(TW)]
    x_g = jnp.stack(
        [jnp.concatenate(wins[g * WPG:(g + 1) * WPG], axis=1) for g in range(GW)],
        axis=0)                                               # (GW, B*V, WPG*C)

    out = pl.pallas_call(
        make_stsgcl_kernel(N, V, B, H, WPG, gcn_num),
        out_shape=jax.ShapeDtypeStruct((GW, B * N, Hc), jnp.float32),
        grid=(GW,),
        in_specs=[
            pl.BlockSpec((None, BV, WPG * C), lambda g: (g, 0, 0)),
            pl.BlockSpec((BV, BV), lambda g: (0, 0)),
            pl.BlockSpec((B * N, BV), lambda g: (0, 0)),
            pl.BlockSpec((None, WPG * C, 2 * Hc), lambda g: (g, 0, 0)),
            pl.BlockSpec((None, 1, 2 * Hc), lambda g: (g, 0, 0)),
            pl.BlockSpec((None, K_eff, Hc, 2 * Hc), lambda g: (g, 0, 0, 0)),
            pl.BlockSpec((None, K_eff, 1, 2 * Hc), lambda g: (g, 0, 0, 0)),
        ],
        out_specs=pl.BlockSpec((None, B * N, Hc), lambda g: (g, 0, 0)),
        compiler_params=pltpu.CompilerParams(
            dimension_semantics=("parallel",)),
    )(x_g, params["A_bd"], params["A_mid"], params["W0"], params["b0"],
      params["Wk"], params["bk"])

    # (GW, B*N, WPG*H) -> (B, T-2, N, H)
    out = out.reshape(GW, B, N, WPG, H).transpose(1, 0, 3, 2, 4).reshape(B, TW, N, H)
    return out


def stsgcl_reference(x, A, temporal_emb, spatial_emb, W0, b0, Wk, bk, gcn_num):
    """Pure-JAX re-implementation of the PyTorch forward, for verification."""
    B, T, N, C = x.shape
    V = 3 * N
    H = W0.shape[1] // 2
    data = x + temporal_emb + spatial_emb
    outs = []
    for i in range(T - 2):
        t = data[:, i:i + 3, :, :].reshape(B, V, C).transpose(1, 0, 2)  # (V,B,C)
        xc = t
        layer_slices = []
        for j in range(gcn_num):
            W = W0[i] if j == 0 else Wk[i, j - 1]       # (2H, Cin)
            bias = b0[i] if j == 0 else bk[i, j - 1]    # (2H,)
            ax = jnp.einsum('vn,nbc->vbc', A, xc)
            axw = jnp.einsum('vbc,oc->vbo', ax, W) + bias
            xc = axw[..., :H] * (1.0 / (1.0 + jnp.exp(-axw[..., H:])))
            layer_slices.append(xc[N:2 * N])
        out_i = jnp.max(jnp.stack(layer_slices, axis=0), axis=0)  # (N, B, H)
        outs.append(out_i.transpose(1, 0, 2))                     # (B, N, H)
    return jnp.stack(outs, axis=1)                                # (B, T-2, N, H)


if __name__ == "__main__":
    # small shapes consistent with the module:
    # batch=2, input_length T=6, num_of_vertices N=16, input_features_num C=4,
    # nhid H=32, gcn_num=2  ->  A is (3N, 3N) = (48, 48)
    B, T, N, C, H, gcn_num = 2, 6, 16, 4, 32, 2
    V = 3 * N
    TW = T - 2
    K = gcn_num - 1
    GW = 2 if (TW % 2 == 0 and TW > 1) else 1    # >=2 parallel steps for v7x megacore
    WPG = TW // GW                               # temporal windows per grid step

    key = jax.random.PRNGKey(0)
    ks = jax.random.split(key, 8)
    x = jax.random.normal(ks[0], (B, T, N, C), jnp.float32)
    A = jax.random.uniform(ks[1], (V, V), jnp.float32)
    # deterministic stand-ins for xavier_normal_(gain=0.0003) embeddings
    temporal_emb = jax.random.normal(ks[2], (1, T, 1, C), jnp.float32) * 3e-4
    spatial_emb = jax.random.normal(ks[3], (1, 1, N, C), jnp.float32) * 3e-4
    # per-window, per-layer Conv2d(1x1) parameters (synthetic, deterministic)
    W0 = jax.random.normal(ks[4], (TW, 2 * H, C), jnp.float32) * 0.1     # layer 0
    b0 = jax.random.normal(ks[5], (TW, 2 * H), jnp.float32) * 0.1
    Wk = jax.random.normal(ks[6], (TW, K, 2 * H, H), jnp.float32) * 0.1  # layers 1..
    bk = jax.random.normal(ks[7], (TW, K, 2 * H), jnp.float32) * 0.1

    params = prepare_stsgcl_params(A, W0, b0, Wk, bk, B=B, WPG=WPG)
    out = stsgcl_forward(x, temporal_emb, spatial_emb, params,
                         gcn_num=gcn_num, WPG=WPG)
    out = jax.block_until_ready(out)

    ref = stsgcl_reference(x, A, temporal_emb, spatial_emb, W0, b0, Wk, bk, gcn_num)
    assert out.shape == (B, TW, N, H), out.shape
    max_err = float(jnp.max(jnp.abs(out - ref)))
    assert jnp.allclose(out, ref, atol=1e-2, rtol=1e-2), max_err
    print("KERNEL_OK")
</pallas_src>

<mosaic_0001>
module attributes {stable_mosaic.version = 11 : i64} {
  func.func @kernel(%arg0: i32, %arg1: memref<1x96x8xf32, #tpu.memory_space<vmem>>, %arg2: memref<96x96xf32, #tpu.memory_space<vmem>>, %arg3: memref<32x96xf32, #tpu.memory_space<vmem>>, %arg4: memref<1x8x128xf32, #tpu.memory_space<vmem>>, %arg5: memref<1x1x128xf32, #tpu.memory_space<vmem>>, %arg6: memref<1x1x64x128xf32, #tpu.memory_space<vmem>>, %arg7: memref<1x1x1x128xf32, #tpu.memory_space<vmem>>, %arg8: memref<1x32x64xf32, #tpu.memory_space<vmem>>) attributes {dimension_semantics = [#tpu.dimension_semantics<parallel>], iteration_bounds = array<i64: 2>, scalar_prefetch = 0 : i64, scratch_operands = 0 : i64, tpu.core_type = #tpu.core_type<tc>, window_params = [{transform_indices = @transform_0, window_bounds = array<i64: 1, 96, 8>}, {pipeline_mode = #tpu.pipeline_mode<synchronous>, transform_indices = @transform_1, window_bounds = array<i64: 96, 96>}, {pipeline_mode = #tpu.pipeline_mode<synchronous>, transform_indices = @transform_2, window_bounds = array<i64: 32, 96>}, {transform_indices = @transform_3, window_bounds = array<i64: 1, 8, 128>}, {transform_indices = @transform_4, window_bounds = array<i64: 1, 1, 128>}, {transform_indices = @transform_5, window_bounds = array<i64: 1, 1, 64, 128>}, {transform_indices = @transform_6, window_bounds = array<i64: 1, 1, 1, 128>}, {transform_indices = @transform_7, window_bounds = array<i64: 1, 32, 64>}]} {
    %c0 = arith.constant 0 : index
    %c0_0 = arith.constant 0 : index
    %0 = vector.load %arg2[%c0, %c0_0] : memref<96x96xf32, #tpu.memory_space<vmem>>, vector<96x96xf32>
    %c0_1 = arith.constant 0 : index
    %c0_2 = arith.constant 0 : index
    %1 = vector.load %arg3[%c0_1, %c0_2] : memref<32x96xf32, #tpu.memory_space<vmem>>, vector<32x96xf32>
    %c0_3 = arith.constant 0 : index
    %c0_4 = arith.constant 0 : index
    %c0_5 = arith.constant 0 : index
    %2 = vector.load %arg1[%c0_3, %c0_4, %c0_5] : memref<1x96x8xf32, #tpu.memory_space<vmem>>, vector<1x96x8xf32>
    %3 = vector.shape_cast %2 : vector<1x96x8xf32> to vector<96x8xf32>
    %c0_6 = arith.constant 0 : index
    %c0_7 = arith.constant 0 : index
    %c0_8 = arith.constant 0 : index
    %4 = vector.load %arg4[%c0_6, %c0_7, %c0_8] : memref<1x8x128xf32, #tpu.memory_space<vmem>>, vector<1x8x128xf32>
    %5 = vector.shape_cast %4 : vector<1x8x128xf32> to vector<8x128xf32>
    %c0_9 = arith.constant 0 : index
    %c0_10 = arith.constant 0 : index
    %c0_11 = arith.constant 0 : index
    %6 = vector.load %arg5[%c0_9, %c0_10, %c0_11] : memref<1x1x128xf32, #tpu.memory_space<vmem>>, vector<1x1x128xf32>
    %7 = vector.shape_cast %6 : vector<1x1x128xf32> to vector<1x128xf32>
    %cst = arith.constant dense<0.000000e+00> : vector<96x8xf32>
    %8 = tpu.matmul %0, %3, %cst {dimension_numbers = #tpu.dot_dimension_numbers<[1], [0], [0], [1], [0, 0, 1, 1], [], []>} : vector<96x96xf32>, vector<96x8xf32>, vector<96x8xf32> -> vector<96x8xf32>
    %cst_12 = arith.constant dense<0.000000e+00> : vector<96x128xf32>
    %9 = tpu.matmul %8, %5, %cst_12 {dimension_numbers = #tpu.dot_dimension_numbers<[1], [0], [0], [1], [0, 0, 1, 1], [], []>} : vector<96x8xf32>, vector<8x128xf32>, vector<96x128xf32> -> vector<96x128xf32>
    %10 = vector.broadcast %7 : vector<1x128xf32> to vector<96x128xf32>
    %11 = arith.addf %9, %10 : vector<96x128xf32>
    %12 = vector.extract_strided_slice %11 {offsets = [0, 0], sizes = [96, 64], strides = [1, 1]} : vector<96x128xf32> to vector<96x64xf32>
    %13 = vector.extract_strided_slice %11 {offsets = [0, 64], sizes = [96, 64], strides = [1, 1]} : vector<96x128xf32> to vector<96x64xf32>
    %cst_13 = arith.constant 5.000000e-01 : f32
    %14 = vector.broadcast %cst_13 : f32 to vector<96x64xf32>
    %15 = arith.mulf %14, %13 : vector<96x64xf32>
    %16 = math.tanh %15 : vector<96x64xf32>
    %cst_14 = arith.constant 1.000000e+00 : f32
    %17 = vector.broadcast %cst_14 : f32 to vector<96x64xf32>
    %18 = arith.addf %16, %17 : vector<96x64xf32>
    %cst_15 = arith.constant 5.000000e-01 : f32
    %19 = vector.broadcast %cst_15 : f32 to vector<96x64xf32>
    %20 = arith.mulf %19, %18 : vector<96x64xf32>
    %21 = arith.mulf %12, %20 : vector<96x64xf32>
    %22 = vector.extract_strided_slice %21 {offsets = [16, 0], sizes = [16, 64], strides = [1, 1]} : vector<96x64xf32> to vector<16x64xf32>
    %23 = vector.extract_strided_slice %21 {offsets = [64, 0], sizes = [16, 64], strides = [1, 1]} : vector<96x64xf32> to vector<16x64xf32>
    %24 = tpu.concatenate %22, %23 in 0 : vector<16x64xf32>, vector<16x64xf32> -> vector<32x64xf32>
    %c0_16 = arith.constant 0 : index
    %c0_17 = arith.constant 0 : index
    %c0_18 = arith.constant 0 : index
    %c0_19 = arith.constant 0 : index
    %25 = vector.load %arg6[%c0_16, %c0_17, %c0_18, %c0_19] : memref<1x1x64x128xf32, #tpu.memory_space<vmem>>, vector<1x1x64x128xf32>
    %26 = vector.shape_cast %25 : vector<1x1x64x128xf32> to vector<64x128xf32>
    %c0_20 = arith.constant 0 : index
    %c0_21 = arith.constant 0 : index
    %c0_22 = arith.constant 0 : index
    %c0_23 = arith.constant 0 : index
    %27 = vector.load %arg7[%c0_20, %c0_21, %c0_22, %c0_23] : memref<1x1x1x128xf32, #tpu.memory_space<vmem>>, vector<1x1x1x128xf32>
    %28 = vector.shape_cast %27 : vector<1x1x1x128xf32> to vector<1x128xf32>
    %cst_24 = arith.constant dense<0.000000e+00> : vector<32x64xf32>
    %29 = tpu.matmul %1, %21, %cst_24 {dimension_numbers = #tpu.dot_dimension_numbers<[1], [0], [0], [1], [0, 0, 1, 1], [], []>} : vector<32x96xf32>, vector<96x64xf32>, vector<32x64xf32> -> vector<32x64xf32>
    %cst_25 = arith.constant dense<0.000000e+00> : vector<32x128xf32>
    %30 = tpu.matmul %29, %26, %cst_25 {dimension_numbers = #tpu.dot_dimension_numbers<[1], [0], [0], [1], [0, 0, 1, 1], [], []>} : vector<32x64xf32>, vector<64x128xf32>, vector<32x128xf32> -> vector<32x128xf32>
    %31 = vector.broadcast %28 : vector<1x128xf32> to vector<32x128xf32>
    %32 = arith.addf %30, %31 : vector<32x128xf32>
    %33 = vector.extract_strided_slice %32 {offsets = [0, 0], sizes = [32, 64], strides = [1, 1]} : vector<32x128xf32> to vector<32x64xf32>
    %34 = vector.extract_strided_slice %32 {offsets = [0, 64], sizes = [32, 64], strides = [1, 1]} : vector<32x128xf32> to vector<32x64xf32>
    %cst_26 = arith.constant 5.000000e-01 : f32
    %35 = vector.broadcast %cst_26 : f32 to vector<32x64xf32>
    %36 = arith.mulf %35, %34 : vector<32x64xf32>
    %37 = math.tanh %36 : vector<32x64xf32>
    %cst_27 = arith.constant 1.000000e+00 : f32
    %38 = vector.broadcast %cst_27 : f32 to vector<32x64xf32>
    %39 = arith.addf %37, %38 : vector<32x64xf32>
    %cst_28 = arith.constant 5.000000e-01 : f32
    %40 = vector.broadcast %cst_28 : f32 to vector<32x64xf32>
    %41 = arith.mulf %40, %39 : vector<32x64xf32>
    %42 = arith.mulf %33, %41 : vector<32x64xf32>
    %43 = arith.maximumf %24, %42 : vector<32x64xf32>
    %c0_29 = arith.constant 0 : index
    %c0_30 = arith.constant 0 : index
    %c0_31 = arith.constant 0 : index
    %44 = vector.load %arg8[%c0_29, %c0_30, %c0_31] : memref<1x32x64xf32, #tpu.memory_space<vmem>>, vector<1x32x64xf32>
    %45 = vector.shape_cast %44 : vector<1x32x64xf32> to vector<32x64xf32>
    %46 = vector.shape_cast %43 : vector<32x64xf32> to vector<1x32x64xf32>
    tpu.vector_store %arg8[%c0_29, %c0_30, %c0_31], %46 {strides = array<i32>} : memref<1x32x64xf32, #tpu.memory_space<vmem>>, vector<1x32x64xf32>,
    return
  }
  func.func @transform_0(%arg0: i32) -> (i32, i32, i32) {
    %c0_i32 = arith.constant 0 : i32
    %c0_i32_0 = arith.constant 0 : i32
    %c0_i32_1 = arith.constant 0 : i32
    return %arg0, %c0_i32, %c0_i32_0 : i32, i32, i32
  }
  func.func @transform_1(%arg0: i32) -> (i32, i32) {
    %c0_i32 = arith.constant 0 : i32
    %c0_i32_0 = arith.constant 0 : i32
    %c0_i32_1 = arith.constant 0 : i32
    return %c0_i32, %c0_i32_0 : i32, i32
  }
  func.func @transform_2(%arg0: i32) -> (i32, i32) {
    %c0_i32 = arith.constant 0 : i32
    %c0_i32_0 = arith.constant 0 : i32
    %c0_i32_1 = arith.constant 0 : i32
    return %c0_i32, %c0_i32_0 : i32, i32
  }
  func.func @transform_3(%arg0: i32) -> (i32, i32, i32) {
    %c0_i32 = arith.constant 0 : i32
    %c0_i32_0 = arith.constant 0 : i32
    %c0_i32_1 = arith.constant 0 : i32
    return %arg0, %c0_i32, %c0_i32_0 : i32, i32, i32
  }
  func.func @transform_4(%arg0: i32) -> (i32, i32, i32) {
    %c0_i32 = arith.constant 0 : i32
    %c0_i32_0 = arith.constant 0 : i32
    %c0_i32_1 = arith.constant 0 : i32
    return %arg0, %c0_i32, %c0_i32_0 : i32, i32, i32
  }
  func.func @transform_5(%arg0: i32) -> (i32, i32, i32, i32) {
    %c0_i32 = arith.constant 0 : i32
    %c0_i32_0 = arith.constant 0 : i32
    %c0_i32_1 = arith.constant 0 : i32
    %c0_i32_2 = arith.constant 0 : i32
    return %arg0, %c0_i32, %c0_i32_0, %c0_i32_1 : i32, i32, i32, i32
  }
  func.func @transform_6(%arg0: i32) -> (i32, i32, i32, i32) {
    %c0_i32 = arith.constant 0 : i32
    %c0_i32_0 = arith.constant 0 : i32
    %c0_i32_1 = arith.constant 0 : i32
    %c0_i32_2 = arith.constant 0 : i32
    return %arg0, %c0_i32, %c0_i32_0, %c0_i32_1 : i32, i32, i32, i32
  }
  func.func @transform_7(%arg0: i32) -> (i32, i32, i32) {
    %c0_i32 = arith.constant 0 : i32
    %c0_i32_0 = arith.constant 0 : i32
    %c0_i32_1 = arith.constant 0 : i32
    return %arg0, %c0_i32, %c0_i32_0 : i32, i32, i32
  }
}

</mosaic_0001>

<bundles_post_ra>
// kernel: tpu_custom_call.1
= control target key start
LH: loop header
LB: loop body
LE: loop exit
PB: predicated region body
PF: predicated region fallthrough
CT: control target
= control target key end

     0   :  { %12 = vsyncpa [#allocation3], 0  ;;  %s2184_s0 = inlined_call_operand.vmem [shape: f32[2,96,8], index: 0, kind: input, shape index: {}]   ;;  %s2185_s1 = inlined_call_operand.vmem [shape: f32[96,96], index: 1, kind: input, shape index: {}]   ;;  %s2186_s2 = inlined_call_operand.hbm [shape: f32[32,96], index: 2, kind: input, shape index: {}]   ;;  %s2187_s3 = inlined_call_operand.hbm [shape: f32[2,8,128], index: 3, kind: input, shape index: {}]   ;;  %s2188_s4 = inlined_call_operand.vmem [shape: f32[2,1,128], index: 4, kind: input, shape index: {}]   ;;  %s2189_s5 = inlined_call_operand.vmem [shape: f32[2,1,64,128], index: 5, kind: input, shape index: {}]   ;;  %s2190_s6 = inlined_call_operand.vmem [shape: f32[2,1,1,128], index: 6, kind: input, shape index: {}]   ;;  %s2191_s7 = inlined_call_operand.hbm [shape: f32[2,32,64], index: 7, kind: output, shape index: {}]  }
   0x1   :  { %13 = vsyncpa [#allocation6], 0 }
   0x2   :  { %15 = vsyncpa [#allocation6 + $0x1], 0 }
   0x3   :  { %16 = vsyncpa [#allocation4], 0 }
   0x4   :  { %18 = vsyncpa [#allocation4 + $0x1], 0  ;;  %s1810_s24 = smov 0   ;;  %s1812_s25 = smov 0  }
   0x5   :  { %s1814_s26 = smov 0   ;;  %s1816_s27 = smov 0  }
   0x6 LB: > { %s1831_s28 = sadd.s32 4294967295, %s1760_s27   ;;  %s1240_s29 = sadd.s32 4294967294, %s1760_s27   ;;  %s1760_s27 = sphi %s1816_s27, %s2211_s27   ;;  %s1756_s26 = sphi %s1814_s26, %s2210_s26   ;;  %s1752_s25 = sphi %s1812_s25, %s2209_s25   ;;  %s1748_s24 = sphi %s1810_s24, %s2208_s24  }
   0x7   : > { %p112_p0 = scmp.ne.s32.totalorder %s1752_s25, %s1748_s24  ;;  %p2192_p1 = scmp.eq.s32.totalorder %s1831_s28, 0 }
   0x8   : > { %p220_p3 = scmp.eq.s32.totalorder %s1240_s29, 1  ;;  %p1241_p5 = scmp.ge.s32.totalorder %s1760_s27, 1 }
   0x9   : > { %p1840_p4 = por %p2192_p1, %p112_p0  ;;  %p227_p7 = scmp.lt.s32.totalorder %s1760_s27, 3 }
   0xa   : > { %p1845_p6 = por %p220_p3, %p112_p0  ;;  %s1762_s10 = smov [#allocation2]  }
   0xb   : > { %s2195_s30 = scalar_select %p1840_p4, 1, 0 }
   0xc   : > { %s2196_s8 = scalar_select %p1845_p6, 1, 0 }
   0xd   : > { %p1850_p8 = pnand %p1241_p5, %p227_p7  ;;  %s242_s11 = sshll.u32 %s1762_s10, 4  ;;  %s1854_s11 = int_to_ptr.vmem [resolvable:$true] %s242_s11 }
   0xe   : > { %s1866_s13 = sadd.s32 1, %s1760_s27   ;;  %s99_s14 = sadd.s32 1, %s1756_s26 }
   0xf   : > { %s2197_s9 = scalar_select %p1850_p8, 1, 0 }
  0x10   : > { %p1546_p9 = pneg %p1850_p8  ;;  %s96_s15 = ssub.s32 %s1760_s27, %s1866_s13 }
  0x11   : > { %s1632_s18 = scalar_lea.hbm %s2186_s2, 512 }
  0x12   : > { %p1861_p11 = pnand %p1546_p9, %p2192_p1  ;;  %p1633_p12 = scmp.ne.s32.totalorder %s2186_s2, %s1632_s18 }
  0x13   : > { %p1639_p5 = scmp.lt.u32.totalorder %s1632_s18, %s2186_s2 }
  0x14   : > { %p1634_p13 = pneg %p1861_p11 }
  0x16   : > { %p1635_p0 = pnand %p1634_p13, %p1633_p12 }
  0x18   : > { %p1636_p3 = pneg %p1635_p0 }
  0x1a   : > { %p1641_p7 = pnand %p1639_p5, %p1636_p3 }
  0x1c   : > { %1644 = shalt.err (!%p1641_p7)
}
  0x1d   : > { %s1645_s23 = scalar_lea.vmem %s1854_s11, 512  ;;  %p1653_p2 = scmp.lt.s32.totalorder %s1854_s11, %s1854_s11 }
  0x1e   : > { %p1646_p9 = scmp.ne.s32.totalorder %s1854_s11, %s1645_s23  ;;  %p1654_p6 = scmp.lt.s32.totalorder %s1645_s23, %s1645_s23 }
  0x20   : > { %p1648_p10 = pnand %p1646_p9, %p1634_p13  ;;  %p1655_p4 = por %p1654_p6, %p1653_p2 }
  0x22   : > { %p1649_p1 = pneg %p1648_p10 }
  0x24   : > { %p1656_p8 = pnand %p1655_p4, %p1649_p1 }
  0x26   : > { %1659 = shalt.err (!%p1656_p8)
}
  0x27   : > { %s1763_s29 = smov 128   ;;  %s1764_s10 = smov 8  }
  0x28   : > { %1549 = dma.hbm_to_vmem [thread:$0]  (!%p1861_p11), %s2186_s2, 512, %s1854_s11, [#allocation3], %s1763_s29, %s1763_s29, %s1764_s10  }
  0x29   : > { %p97_p2 = scmp.eq.s32.totalorder %s96_s15, 0  ;;  %p106_p1 = scmp.ne.s32.totalorder %s1756_s26, %s1752_s25 }
  0x2a   : > { %p107_p4 = scmp.eq.s32.totalorder %s1760_s27, 0  ;;  %p1559_p6 = scmp.lt.s32.totalorder %s1760_s27, 2 }
  0x2b   : > { %s1897_s18 = scalar_select %p97_p2, %s1756_s26, %s99_s14  }
  0x2c   : > { %p108_p8 = por %p107_p4, %p106_p1  ;;  %p2199_p10 = scmp.eq.s32.totalorder %s1831_s28, 1 }
  0x2d   : > { %s264_s20 = sand.u32 1, %s1756_s26   ;;  %s1245_s21 = sshll.u32 %s1760_s27, 7 }
  0x2e   : > { %p1901_p12 = por %p2199_p10, %p106_p1  ;;  %s1244_s22 = sshll.u32 %s264_s20, 3 }
  0x2f   : > { %s1910_s16 = scalar_lea.hbm %s2187_s3, %s1245_s21  ;;  %s268_s11 = scalar_lea.vmem [#allocation5], %s1244_s22 }
  0x30   : > { %s275_s14 = sshll.u32 %s268_s11, 4  ;;  %p1912_p11 = pnand %p1559_p6, %p108_p8  ;;  %s1916_s14 = int_to_ptr.vmem [resolvable:$true] %s275_s14 }
  0x31   : > { %s265_s29 = scalar_lea.sflag [#allocation6], %s264_s20  ;;  %s1660_s10 = scalar_lea.hbm %s1910_s16, 128 }
  0x32   : > { %p1661_p13 = scmp.ne.s32.totalorder %s1910_s16, %s1660_s10  ;;  %p1662_p0 = pneg %p1912_p11 }
  0x33   : > { %s1665_s22 = scalar_lea.hbm %s2187_s3, 256  ;;  %p1666_p7 = scmp.lt.u32.totalorder %s1910_s16, %s2187_s3 }
  0x34   : > { %p1663_p3 = pnand %p1662_p0, %p1661_p13  ;;  %p1667_p9 = scmp.lt.u32.totalorder %s1665_s22, %s1660_s10 }
  0x35   : > { %p1669_p1 = scmp.lt.u32.totalorder %s1660_s10, %s1910_s16 }
  0x36   : > { %p1664_p5 = pneg %p1663_p3  ;;  %p1668_p2 = por %p1667_p9, %p1666_p7 }
  0x38   : > { %p1670_p4 = por %p1669_p1, %p1668_p2 }
  0x3a   : > { %p1671_p6 = pnand %p1670_p4, %p1664_p5 }
  0x3c   : > { %1674 = shalt.err (!%p1671_p6)
}
  0x3d   : > { %s1675_s20 = scalar_lea.vmem %s1916_s14, 128  ;;  %s1765_s11 = smov [#allocation5]  }
  0x3e   : > { %p1676_p8 = scmp.ne.s32.totalorder %s1916_s14, %s1675_s20  ;;  %s1680_s17 = sshll.u32 %s1765_s11, 4  ;;  %s1681_s17 = int_to_ptr.vmem [resolvable:$false] %s1680_s17 }
  0x3f   : > { %s1682_s21 = scalar_lea.vmem %s1681_s17, 256  ;;  %p1683_p3 = scmp.lt.s32.totalorder %s1916_s14, %s1681_s17 }
  0x40   : > { %p1678_p10 = pnand %p1676_p8, %p1662_p0  ;;  %p1684_p7 = scmp.lt.s32.totalorder %s1682_s21, %s1675_s20 }
  0x42   : > { %p1679_p13 = pneg %p1678_p10  ;;  %p1685_p9 = por %p1684_p7, %p1683_p3 }
  0x44   : > { %p1686_p2 = pnand %p1685_p9, %p1679_p13 }
  0x46   : > { %1689 = shalt.err (!%p1686_p2)
}
  0x47   : > { %1553 = dma.hbm_to_vmem [thread:$0]  (!%p1912_p11), %s1910_s16, 128, %s1916_s14, %s265_s29  }
  0x48   : > { %p2202_p5 = scmp.ne.s32.totalorder %s2197_s9, 0 }
  0x49   : > { %p2203_p0 = scmp.eq.s32.totalorder (!%p2202_p5), %s1831_s28, 0 }
  0x4a   : > { %304 = sbr.rel (%p2202_p5) target bundleno = 1297 (0x511), region = 48 }
  0x51   : > { %1735 = dma.done.wait (%p2203_p0), [#allocation3], 512   ;;  %p2204_p1 = pmov %p2203_p0 }
  0x52   : > { %s1950_s10 = sand.u32 1, %s1752_s25   ;;  %p2205_p11 = scmp.ne.s32.totalorder %s2195_s30, 0 }
  0x53   : > { %1737 = vsyncadd (%p2204_p1), [#allocation3], 4294966784  ;;  %s1248_s22 = sshll.u32 %s1950_s10, 3  ;;  %s311_s15 = scalar_lea.sflag [#allocation6], %s1950_s10 }
  0x54   : > { %s1954_s12 = scalar_lea.vmem [#allocation5], %s1248_s22 }
  0x55   : > { %1739 = dma.done.wait (%p2205_p11), %s311_s15, 128  }
  0x56   : > { %1741 = vsyncadd (%p2205_p11), %s311_s15, 4294967168  ;;  %p361_p4 = scmp.lt.s32.totalorder %s1831_s28, 1  ;;  %vm407_vm0 = vcmask 785408   ;;  %v377_v8 = vld [vmem:[%s2185_s1] sm:$0xff]  ;;  %v378_v19 = vld [vmem:[%s2185_s1 + $0x8] sm:$0xff]  ;;  %vm575_vm1 = vcmask 64512  }
  0x57   : > { %1383 = vmatprep.mubr.msk.f32.mxu0 %vm407_vm0, %v377_v8  ;;  %v379_v20 = vld [vmem:[%s2185_s1 + $0x10] sm:$0xff]  ;;  %v380_v21 = vld [vmem:[%s2185_s1 + $0x18] sm:$0xff]  ;;  %v381_v22 = vld [vmem:[%s2185_s1 + $0x20] sm:$0xff]  ;;  %s1766_s21 = smov 64   ;;  %vm957_vm2 = vcmask 523264   ;;  %s1293_s11 = sshll.u32 %s1831_s28, 9 }
  0x58   : > { %s1962_s9 = scalar_select %p361_p4, %s1831_s28, 1  ;;  %v382_v23 = vld [vmem:[%s2185_s1 + $0x28] sm:$0xff]  ;;  %v383_v24 = vld [vmem:[%s2185_s1 + $0x30] sm:$0xff]  ;;  %v384_v25 = vld [vmem:[%s2185_s1 + $0x38] sm:$0xff] }
  0x59   : > { %v385_v26 = vld [vmem:[%s2185_s1 + $0x40] sm:$0xff]  ;;  %v386_v27 = vld [vmem:[%s2185_s1 + $0x48] sm:$0xff]  ;;  %v387_v28 = vld [vmem:[%s2185_s1 + $0x50] sm:$0xff]  ;;  %s1100_s28 = scalar_lea.sflag [#allocation4], %s1950_s10 }
  0x5a   : > { %s1537_s16 = smul.u32 96, %s1962_s9  ;;  %v388_v29 = vld [vmem:[%s2185_s1 + $0x58] sm:$0xff]  ;;  %v405_v30 = vld [vmem:[%s1954_s12] sm:$0xff]  ;;  %s368_s17 = scalar_lea.vmem %s2188_s4, %s1962_s9 }
  0x5b   : > { %1401 = vmatprep.subr.mxu1 %v405_v30  ;;  %v1265_v43 = vld [vmem:[%s368_s17] ss:$0 sm:$0xff]  ;;  %s1292_s22 = sshll.u32 %s1962_s9, 6  ;;  %s376_s30 = scalar_lea.vmem %s2190_s6, %s1962_s9 }
  0x5c   : > { %s365_s23 = scalar_lea.vmem %s2184_s0, %s1537_s16  ;;  %1402 = vmatpush3.msra.mxu1 %v405_v30  ;;  %s373_s14 = scalar_lea.vmem %s2189_s5, %s1292_s22 }
  0x5d   : > { %v393_v0 = vld [vmem:[%s365_s23] sm:$0xff]  ;;  %v394_v1 = vld [vmem:[%s365_s23 + $0x8] sm:$0xff]  ;;  %v395_v2 = vld [vmem:[%s365_s23 + $0x10] sm:$0xff]  ;;  %s1249_s9 = sshll.u32 %s1950_s10, 5  ;;  %s2137_s22 = scalar_lea.hbm %s2191_s7, %s1293_s11 }
  0x5e   : > { %v1473_v3 = vpack.c.bf16 %v394_v1, %v393_v0  ;;  %v396_v4 = vld [vmem:[%s365_s23 + $0x18] sm:$0xff]  ;;  %v397_v6 = vld [vmem:[%s365_s23 + $0x20] sm:$0xff]  ;;  %v398_v7 = vld [vmem:[%s365_s23 + $0x28] sm:$0xff]  ;;  %s360_s20 = scalar_lea.vmem [#allocation7], %s1249_s9  ;;  %s1767_s16 = smov [#allocation7]  }
  0x5f   : > { %v1477_v5 = vpack.c.bf16 %v396_v4, %v395_v2  ;;  %v1481_v9 = vpack.c.bf16 %v398_v7, %v397_v6  ;;  %v399_v10 = vld [vmem:[%s365_s23 + $0x30] sm:$0xff]  ;;  %v400_v11 = vld [vmem:[%s365_s23 + $0x38] sm:$0xff]  ;;  %v401_v13 = vld [vmem:[%s365_s23 + $0x40] sm:$0xff]  ;;  %s1113_s12 = sshll.u32 %s360_s20, 4  ;;  %s2130_s12 = int_to_ptr.vmem [resolvable:$true] %s1113_s12 }
  0x60   : > { %1474 = vmatprep.subr.bf16.mxu0 %v1473_v3  ;;  %v1485_v12 = vpack.c.bf16 %v400_v11, %v399_v10  ;;  %v402_v14 = vld [vmem:[%s365_s23 + $0x48] sm:$0xff]  ;;  %v403_v16 = vld [vmem:[%s365_s23 + $0x50] sm:$0xff]  ;;  %v404_v17 = vld [vmem:[%s365_s23 + $0x58] sm:$0xff]  ;;  %s1690_s15 = scalar_lea.vmem %s2130_s12, 512 }
  0x61   : > { %1476 = vmatpush3.bf16.msra.mxu0 %v1473_v3  ;;  %v1489_v15 = vpack.c.bf16 %v402_v14, %v401_v13  ;;  %v1493_v18 = vpack.c.bf16 %v404_v17, %v403_v16  ;;  %p1691_p6 = scmp.ne.s32.totalorder %s2130_s12, %s1690_s15 }
  0x62   : > { %1478 = vmatprep.subr.bf16.mxu0 %v1477_v5 }
  0x63   : > { %p1692_p8 = pnand %p1691_p6, %p1901_p12 }
  0x65   : > { %1480 = vmatpush3.bf16.msra.mxu0 %v1477_v5  ;;  %p1693_p10 = pneg %p1692_p8 }
  0x66   : > { %1482 = vmatprep.subr.bf16.mxu0 %v1481_v9 }
  0x69   : > { %1484 = vmatpush3.bf16.msra.mxu0 %v1481_v9 }
  0x6a   : > { %1486 = vmatprep.subr.bf16.mxu0 %v1485_v12 }
  0x6d   : > { %1488 = vmatpush3.bf16.msra.mxu0 %v1485_v12 }
  0x6e   : > { %1490 = vmatprep.subr.bf16.mxu0 %v1489_v15 }
  0x71   : > { %1492 = vmatpush3.bf16.msra.mxu0 %v1489_v15 }
  0x72   : > { %1494 = vmatprep.subr.bf16.mxu0 %v1493_v18 }
  0x75   : > { %1496 = vmatpush3.bf16.msra.mxu0 %v1493_v18 }
  0x78   : > { %1384 = vmatmul.mubr.msk.f32.vlgmr.msra.gmra.mrb[0].mxu0 %vm407_vm0, %v378_v19 }
  0x79   : > { %1386 = vmatprep.mubr.msk.f32.mxu0 %vm407_vm0, %v379_v20 }
  0x7c   : > { %1387 = vmatmul.mubr.msk.f32.gmra.mrb[2].mxu0 %vm407_vm0, %v380_v21 }
  0x7d   : > { %1389 = vmatprep.mubr.msk.f32.mxu0 %vm407_vm0, %v381_v22 }
  0x80   : > { %1390 = vmatmul.mubr.msk.f32.gmra.mrb[4].mxu0 %vm407_vm0, %v382_v23 }
  0x81   : > { %1392 = vmatprep.mubr.msk.f32.mxu0 %vm407_vm0, %v383_v24 }
  0x84   : > { %1393 = vmatmul.mubr.msk.f32.gmra.mrb[6].mxu0 %vm407_vm0, %v384_v25 }
  0x85   : > { %1395 = vmatprep.mubr.msk.f32.mxu0 %vm407_vm0, %v385_v26 }
  0x88   : > { %1396 = vmatmul.mubr.msk.f32.gmra.mrb[8].mxu0 %vm407_vm0, %v386_v27 }
  0x89   : > { %1398 = vmatprep.mubr.msk.f32.mxu0 %vm407_vm0, %v387_v28 }
  0x8c   : > { %1399 = vmatmul.mubr.msk.f32.gmra.mrb[10].mxu0 %vm407_vm0, %v388_v29 }
 0x14b   : > { %v1385_v31 = vpop.f32.mrb[0].mxu0 }
 0x14c   : > { %v510_v32 = vpop.f32.mrb[1].mxu0 }
 0x14d   : > { %1403 = vmatprep.mubr.msk.f32.mxu1 %vm575_vm1, %v510_v32 }
 0x14e   : > { %1404 = vmatmul.mubr.msk.f32.vlgmr.msra.gmra.mrb[0].mxu1 %vm575_vm1, %v1385_v31 }
 0x14f   : > { %v1388_v33 = vpop.f32.mrb[2].mxu0 }
 0x150   : > { %v520_v34 = vpop.f32.mrb[3].mxu0 }
 0x151   : > { %1406 = vmatprep.mubr.msk.f32.mxu1 %vm575_vm1, %v520_v34 }
 0x152   : > { %1407 = vmatmul.mubr.msk.f32.gmra.mrb[2].mxu1 %vm575_vm1, %v1388_v33 }
 0x153   : > { %v1391_v35 = vpop.f32.mrb[4].mxu0 }
 0x154   : > { %v530_v36 = vpop.f32.mrb[5].mxu0 }
 0x155   : > { %1409 = vmatprep.mubr.msk.f32.mxu1 %vm575_vm1, %v530_v36 }
 0x156   : > { %1410 = vmatmul.mubr.msk.f32.gmra.mrb[4].mxu1 %vm575_vm1, %v1391_v35 }
 0x157   : > { %v1394_v37 = vpop.f32.mrb[6].mxu0 }
 0x158   : > { %v540_v38 = vpop.f32.mrb[7].mxu0 }
 0x159   : > { %1412 = vmatprep.mubr.msk.f32.mxu1 %vm575_vm1, %v540_v38 }
 0x15a   : > { %1413 = vmatmul.mubr.msk.f32.gmra.mrb[6].mxu1 %vm575_vm1, %v1394_v37 }
 0x15b   : > { %v1397_v39 = vpop.f32.mrb[8].mxu0 }
 0x15c   : > { %v550_v40 = vpop.f32.mrb[9].mxu0 }
 0x15d   : > { %1415 = vmatprep.mubr.msk.f32.mxu1 %vm575_vm1, %v550_v40 }
 0x15e   : > { %1416 = vmatmul.mubr.msk.f32.gmra.mrb[8].mxu1 %vm575_vm1, %v1397_v39 }
 0x15f   : > { %v1400_v41 = vpop.f32.mrb[10].mxu0 }
 0x160   : > { %v560_v42 = vpop.f32.mrb[11].mxu0 }
 0x161   : > { %1418 = vmatprep.mubr.msk.f32.mxu1 %vm575_vm1, %v560_v42 }
 0x162   : > { %1419 = vmatmul.mubr.msk.f32.gmra.mrb[10].mxu1 %vm575_vm1, %v1400_v41 }
 0x221   : > { %v1405_v44 = vpop.f32.mrb[0].mxu1 }
 0x222   : > { %v2033_v45 = vadd.f32 %v1405_v44, %v1265_v43  ;;  %v678_v46 = vpop.f32.mrb[1].mxu1 }
 0x223   : > { %v2035_v47 = vadd.f32 %v1265_v43, %v678_v46 }
 0x224   : > { %v738_v48 = vmul.f32 0.5, %v2033_v45 }
 0x225   : > { %v737_v49 = vmul.f32 0.5, %v2035_v47  ;;  %v1408_v50 = vpop.f32.mrb[2].mxu1 }
 0x226   : > { %1600 = vtanh.f32 %v738_v48  ;;  %v2039_v51 = vadd.f32 %v1408_v50, %v1265_v43  ;;  %v688_v52 = vpop.f32.mrb[3].mxu1  ;;  %v389_v50 = vld [vmem:[#allocation2] sm:$0xff] }
 0x227   : > { %1602 = vtanh.f32 %v737_v49  ;;  %v2041_v53 = vadd.f32 %v1265_v43, %v688_v52  ;;  %1445 = vmatprep.mubr.msk.f32.mxu1 %vm407_vm0, %v389_v50 }
 0x228   : > { %v740_v54 = vmul.f32 0.5, %v2039_v51 }
 0x229   : > { %v739_v55 = vmul.f32 0.5, %v2041_v53  ;;  %v1411_v56 = vpop.f32.mrb[4].mxu1 }
 0x22a   : > { %1604 = vtanh.f32 %v740_v54  ;;  %v2045_v57 = vadd.f32 %v1411_v56, %v1265_v43  ;;  %v698_v58 = vpop.f32.mrb[5].mxu1 }
 0x22b   : > { %1606 = vtanh.f32 %v739_v55  ;;  %v2047_v59 = vadd.f32 %v1265_v43, %v698_v58 }
 0x22c   : > { %v742_v60 = vmul.f32 0.5, %v2045_v57 }
 0x22d   : > { %v741_v61 = vmul.f32 0.5, %v2047_v59  ;;  %v1414_v62 = vpop.f32.mrb[6].mxu1 }
 0x22e   : > { %1608 = vtanh.f32 %v742_v60  ;;  %v2051_v63 = vadd.f32 %v1414_v62, %v1265_v43  ;;  %v708_v0 = vpop.f32.mrb[7].mxu1 }
 0x22f   : > { %1610 = vtanh.f32 %v741_v61  ;;  %v2053_v1 = vadd.f32 %v1265_v43, %v708_v0 }
 0x230   : > { %v1601_v2 = vpop.eup %1600  ;;  %v744_v3 = vmul.f32 0.5, %v2051_v63 }
 0x231   : > { %v1603_v4 = vpop.eup %1602  ;;  %v743_v5 = vmul.f32 0.5, %v2053_v1  ;;  %v1417_v6 = vpop.f32.mrb[8].mxu1  ;;  %v762_v14 = vadd.f32 1.0, %v1601_v2 }
 0x232   : > { %1612 = vtanh.f32 %v744_v3  ;;  %v2057_v7 = vadd.f32 %v1417_v6, %v1265_v43  ;;  %v718_v8 = vpop.f32.mrb[9].mxu1  ;;  %v761_v9 = vadd.f32 1.0, %v1603_v4 }
 0x233   : > { %1614 = vtanh.f32 %v743_v5  ;;  %v2059_v10 = vadd.f32 %v1265_v43, %v718_v8  ;;  %v774_v26 = vmul.f32 0.5, %v762_v14 }
 0x234   : > { %v1605_v11 = vpop.eup %1604  ;;  %v746_v12 = vmul.f32 0.5, %v2057_v7  ;;  %v773_v13 = vmul.f32 0.5, %v761_v9 }
 0x235   : > { %v1607_v15 = vpop.eup %1606  ;;  %v745_v16 = vmul.f32 0.5, %v2059_v10  ;;  %v1420_v17 = vpop.f32.mrb[10].mxu1  ;;  %v764_v18 = vadd.f32 1.0, %v1605_v11 }
 0x236   : > { %1616 = vtanh.f32 %v746_v12  ;;  %v2063_v19 = vadd.f32 %v1420_v17, %v1265_v43  ;;  %797 = vrot.lane.b32.xlu0 %v773_v13, %s1766_s21  ;;  %v728_v20 = vpop.f32.mrb[11].mxu1  ;;  %v763_v23 = vadd.f32 1.0, %v1607_v15 }
 0x237   : > { %1618 = vtanh.f32 %v745_v16  ;;  %v2066_v21 = vadd.f32 %v1265_v43, %v728_v20  ;;  %v776_v22 = vmul.f32 0.5, %v764_v18 }
 0x238   : > { %v1609_v24 = vpop.eup %1608  ;;  %v748_v25 = vmul.f32 0.5, %v2063_v19  ;;  %v775_v30 = vmul.f32 0.5, %v763_v23 }
 0x239   : > { %v1611_v27 = vpop.eup %1610  ;;  %v747_v28 = vmul.f32 0.5, %v2066_v21  ;;  %803 = vrot.lane.b32.xlu1 %v776_v22, %s1766_s21  ;;  %v766_v31 = vadd.f32 1.0, %v1609_v24  ;;  %v846_v22 = vld [vmem:[%s373_s14 + $0x8] sm:$0xff]  ;;  %v847_v24 = vld [vmem:[%s373_s14 + $0x10] sm:$0xff] }
 0x23a   : > { %1620 = vtanh.f32 %v748_v25  ;;  %799 = vrot.lane.b32.xlu0 %v774_v26, %s1766_s21  ;;  %v765_v29 = vadd.f32 1.0, %v1611_v27  ;;  %v848_v25 = vld [vmem:[%s373_s14 + $0x18] sm:$0xff]  ;;  %v390_v26 = vld [vmem:[#allocation2 + $0x8] sm:$0xff]  ;;  %v391_v27 = vld [vmem:[#allocation2 + $0x10] sm:$0xff] }
 0x23b   : > { %1622 = vtanh.f32 %v747_v28  ;;  %v778_v36 = vmul.f32 0.5, %v766_v31  ;;  %v1525_v28 = vpack.c.bf16 %v848_v25, %v847_v24  ;;  %v851_v31 = vld [vmem:[%s373_s14 + $0x30] sm:$0xff] }
 0x23c   : > { %v1613_v32 = vpop.eup %1612  ;;  %v777_v33 = vmul.f32 0.5, %v765_v29  ;;  %v849_v29 = vld [vmem:[%s373_s14 + $0x20] sm:$0xff] }
 0x23d   : > { %v1615_v34 = vpop.eup %1614  ;;  %801 = vrot.lane.b32.xlu1 %v775_v30, %s1766_s21  ;;  %v768_v37 = vadd.f32 1.0, %v1613_v32  ;;  %v850_v30 = vld [vmem:[%s373_s14 + $0x28] sm:$0xff]  ;;  %v852_v32 = vld [vmem:[%s373_s14 + $0x38] sm:$0xff] }
 0x23e   : > { %805 = vrot.lane.b32.xlu0 %v777_v33, %s1766_s21  ;;  %v767_v35 = vadd.f32 1.0, %v1615_v34  ;;  %v1533_v33 = vpack.c.bf16 %v852_v32, %v851_v31 }
 0x23f   : > { %v780_v42 = vmul.f32 0.5, %v768_v37 }
 0x240   : > { %v1617_v38 = vpop.eup %1616  ;;  %v779_v39 = vmul.f32 0.5, %v767_v35 }
 0x241   : > { %v1619_v40 = vpop.eup %1618  ;;  %807 = vrot.lane.b32.xlu1 %v778_v36, %s1766_s21  ;;  %v770_v43 = vadd.f32 1.0, %v1617_v38  ;;  %v1282_v38 = vld [vmem:[%s376_s30] ss:$0 sm:$0xff] }
 0x242   : > { %809 = vrot.lane.b32.xlu0 %v779_v39, %s1766_s21  ;;  %v769_v41 = vadd.f32 1.0, %v1619_v40 }
 0x243   : > { %v782_v52 = vmul.f32 0.5, %v770_v43 }
 0x244   : > { %v1621_v44 = vpop.eup %1620  ;;  %v781_v46 = vmul.f32 0.5, %v769_v41 }
 0x245   : > { %v1623_v48 = vpop.eup %1622  ;;  %811 = vrot.lane.b32.xlu1 %v780_v42, %s1766_s21  ;;  %v772_v54 = vadd.f32 1.0, %v1621_v44 }
 0x246   : > { %813 = vrot.lane.b32.xlu0 %v781_v46, %s1766_s21  ;;  %v771_v49 = vadd.f32 1.0, %v1623_v48 }
 0x247   : > { %v784_v56 = vmul.f32 0.5, %v772_v54 }
 0x248   : > { %v783_v55 = vmul.f32 0.5, %v771_v49 }
 0x249   : > { %815 = vrot.lane.b32.xlu1 %v782_v52, %s1766_s21 }
 0x24a   : > { %817 = vrot.lane.b32.xlu0 %v783_v55, %s1766_s21 }
 0x24d   : > { %819 = vrot.lane.b32.xlu1 %v784_v56, %s1766_s21 }
 0x2a8   : > { %v798_v58 = vpop.permute.xlu0 %797 }
 0x2a9   : > { %v833_v62 = vmul.f32 %v798_v58, %v2035_v47 }
 0x2ab   : > { %v804_v60 = vpop.permute.xlu1 %803 }
 0x2ac   : > { %v800_v61 = vpop.permute.xlu0 %799  ;;  %v2085_v4 = vmul.f32 %v804_v60, %v2039_v51 }
 0x2ad   : > { %v834_v0 = vmul.f32 %v800_v61, %v2033_v45 }
 0x2af   : > { %v1497_v2 = vpack.c.bf16 %v834_v0, %v833_v62  ;;  %v802_v3 = vpop.permute.xlu1 %801 }
 0x2b0   : > { %v2088_v5 = vmul.f32 %v802_v3, %v2041_v53  ;;  %v806_v6 = vpop.permute.xlu0 %805 }
 0x2b1   : > { %1498 = vmatprep.subr.bf16.mxu1 %v1497_v2  ;;  %v837_v47 = vmul.f32 %v806_v6, %v2047_v59 }
 0x2b2   : > { %v1501_v8 = vpack.c.bf16 %v2085_v4, %v2088_v5  ;;  %1500 = vmatpush3.bf16.msra.mxu1 %v1497_v2 }
 0x2b3   : > { %v808_v9 = vpop.permute.xlu1 %807 }
 0x2b4   : > { %v838_v45 = vmul.f32 %v808_v9, %v2045_v57  ;;  %1502 = vmatprep.subr.bf16.mxu1 %v1501_v8  ;;  %v810_v11 = vpop.permute.xlu0 %809 }
 0x2b5   : > { %v839_v53 = vmul.f32 %v810_v11, %v2053_v1 }
 0x2b6   : > { %v1505_v12 = vpack.c.bf16 %v838_v45, %v837_v47  ;;  %1504 = vmatpush3.bf16.msra.mxu1 %v1501_v8 }
 0x2b7   : > { %v812_v51 = vpop.permute.xlu1 %811 }
 0x2b8   : > { %v840_v13 = vmul.f32 %v812_v51, %v2051_v63  ;;  %1506 = vmatprep.subr.bf16.mxu1 %v1505_v12  ;;  %v814_v14 = vpop.permute.xlu0 %813 }
 0x2b9   : > { %v2098_v17 = vmul.f32 %v814_v14, %v2059_v10  ;;  %v845_v10 = vld [vmem:[%s373_s14] sm:$0xff]  ;;  %s1694_s14 = sshll.u32 %s1767_s16, 4  ;;  %s1695_s14 = int_to_ptr.vmem [resolvable:$false] %s1694_s14 }
 0x2ba   : > { %v1509_v15 = vpack.c.bf16 %v840_v13, %v839_v53  ;;  %1508 = vmatpush3.bf16.msra.mxu1 %v1505_v12  ;;  %v1521_v23 = vpack.c.bf16 %v846_v22, %v845_v10  ;;  %s1696_s29 = scalar_lea.vmem %s1695_s14, 1024  ;;  %p1697_p13 = scmp.lt.s32.totalorder %s2130_s12, %s1695_s14 }
 0x2bb   : > { %v816_v16 = vpop.permute.xlu1 %815  ;;  %p1698_p3 = scmp.lt.s32.totalorder %s1696_s29, %s1690_s15 }
 0x2bc   : > { %v2101_v57 = vmul.f32 %v816_v16, %v2057_v7  ;;  %1510 = vmatprep.subr.bf16.mxu1 %v1509_v15  ;;  %v818_v59 = vpop.permute.xlu0 %817 }
 0x2bd   : > { %v843_v18 = vmul.f32 %v818_v59, %v2066_v21  ;;  %v1529_v21 = vpack.c.bf16 %v850_v30, %v849_v29  ;;  %p1699_p7 = por %p1698_p3, %p1697_p13 }
 0x2be   : > { %v1513_v63 = vpack.c.bf16 %v2101_v57, %v2098_v17  ;;  %1512 = vmatpush3.bf16.msra.mxu1 %v1509_v15 }
 0x2bf   : > { %v820_v1 = vpop.permute.xlu1 %819  ;;  %p1700_p9 = pnand %p1699_p7, %p1693_p10 }
 0x2c0   : > { %v844_v20 = vmul.f32 %v820_v1, %v2063_v19  ;;  %1514 = vmatprep.subr.bf16.mxu1 %v1513_v63  ;;  %v392_v19 = vld [vmem:[#allocation2 + $0x18] sm:$0xff] }
 0x2c2   : > { %v1517_v7 = vpack.c.bf16 %v844_v20, %v843_v18  ;;  %1516 = vmatpush3.bf16.msra.mxu1 %v1513_v63 }
 0x2c4   : > { %1518 = vmatprep.subr.bf16.mxu1 %v1517_v7 }
 0x2c6   : > { %1520 = vmatpush3.bf16.msra.mxu1 %v1517_v7 }
 0x2c7   : > { %1522 = vmatprep.subr.bf16.mxu1 %v1521_v23 }
 0x2c9   : > { %1446 = vmatmul.mubr.msk.f32.vlgmr.msra.gmra.mrb[12].mxu1 %vm407_vm0, %v390_v26 }
 0x2ca   : > { %1448 = vmatprep.mubr.msk.f32.mxu1 %vm407_vm0, %v391_v27  ;;  %1524 = vmatpush3.bf16.msra.mxu1 %v1521_v23 }
 0x2cb   : > { %1526 = vmatprep.subr.bf16.mxu1 %v1525_v28 }
 0x2cd   : > { %1449 = vmatmul.mubr.msk.f32.gmra.mrb[14].mxu1 %vm407_vm0, %v392_v19 }
 0x2ce   : > { %1528 = vmatpush3.bf16.msra.mxu1 %v1525_v28 }
 0x2cf   : > { %1530 = vmatprep.subr.bf16.mxu1 %v1529_v21 }
 0x2d2   : > { %1532 = vmatpush3.bf16.msra.mxu1 %v1529_v21 }
 0x2d3   : > { %1534 = vmatprep.subr.bf16.mxu1 %v1533_v33 }
 0x2d6   : > { %1536 = vmatpush3.bf16.msra.mxu1 %v1533_v33 }
 0x39c   : > { %v1447_v34 = vpop.f32.mrb[12].mxu1 }
 0x39d   : > { %v932_v35 = vpop.f32.mrb[13].mxu1 }
 0x39e   : > { %1467 = vmatprep.mubr.msk.f32.mxu1 %vm957_vm2, %v932_v35 }
 0x39f   : > { %1468 = vmatmul.mubr.msk.f32.vlgmr.msra.gmra.mrb[16].mxu1 %vm957_vm2, %v1447_v34 }
 0x3a0   : > { %v1450_v36 = vpop.f32.mrb[14].mxu1 }
 0x3a1   : > { %v942_v37 = vpop.f32.mrb[15].mxu1 }
 0x3a2   : > { %1470 = vmatprep.mubr.msk.f32.mxu1 %vm957_vm2, %v942_v37 }
 0x3a3   : > { %1471 = vmatmul.mubr.msk.f32.gmra.mrb[18].mxu1 %vm957_vm2, %v1450_v36 }
 0x472   : > { %v1469_v39 = vpop.f32.mrb[16].mxu1 }
 0x473   : > { %v1042_v40 = vadd.f32 %v1469_v39, %v1282_v38  ;;  %v1036_v41 = vpop.f32.mrb[17].mxu1 }
 0x474   : > { %v1037_v42 = vadd.f32 %v1282_v38, %v1036_v41 }
 0x475   : > { %v1056_v43 = vmul.f32 0.5, %v1042_v40 }
 0x476   : > { %v1055_v44 = vmul.f32 0.5, %v1037_v42  ;;  %v1472_v46 = vpop.f32.mrb[18].mxu1 }
 0x477   : > { %1624 = vtanh.f32 %v1056_v43  ;;  %v1052_v48 = vadd.f32 %v1472_v46, %v1282_v38  ;;  %v1046_v49 = vpop.f32.mrb[19].mxu1 }
 0x478   : > { %1626 = vtanh.f32 %v1055_v44  ;;  %v1047_v50 = vadd.f32 %v1282_v38, %v1046_v49 }
 0x479   : > { %v1058_v52 = vmul.f32 0.5, %v1052_v48 }
 0x47a   : > { %v1057_v54 = vmul.f32 0.5, %v1047_v50 }
 0x47b   : > { %1628 = vtanh.f32 %v1058_v52 }
 0x47c   : > { %1630 = vtanh.f32 %v1057_v54 }
 0x481   : > { %v1625_v55 = vpop.eup %1624 }
 0x482   : > { %v1627_v56 = vpop.eup %1626  ;;  %v1064_v58 = vadd.f32 1.0, %v1625_v55 }
 0x483   : > { %v1063_v60 = vadd.f32 1.0, %v1627_v56 }
 0x484   : > { %v1068_v61 = vmul.f32 0.5, %v1064_v58 }
 0x485   : > { %v1629_v62 = vpop.eup %1628  ;;  %v1067_v0 = vmul.f32 0.5, %v1063_v60 }
 0x486   : > { %v1631_v2 = vpop.eup %1630  ;;  %1077 = vrot.lane.b32.xlu1 %v1068_v61, %s1766_s21  ;;  %v1066_v3 = vadd.f32 1.0, %v1629_v62 }
 0x487   : > { %1075 = vrot.lane.b32.xlu0 %v1067_v0, %s1766_s21  ;;  %v1065_v6 = vadd.f32 1.0, %v1631_v2 }
 0x488   : > { %v1070_v8 = vmul.f32 0.5, %v1066_v3 }
 0x489   : > { %v1069_v9 = vmul.f32 0.5, %v1065_v6 }
 0x48a   : > { %1081 = vrot.lane.b32.xlu1 %v1070_v8, %s1766_s21 }
 0x48b   : > { %1079 = vrot.lane.b32.xlu0 %v1069_v9, %s1766_s21 }
 0x4f8   : > { %v1078_v47 = vpop.permute.xlu1 %1077 }
 0x4f9   : > { %v1088_v45 = vmul.f32 %v1078_v47, %v1042_v40  ;;  %v1076_v11 = vpop.permute.xlu0 %1075 }
 0x4fa   : > { %v1087_v12 = vmul.f32 %v1076_v11, %v1037_v42 }
 0x4fb   : > { %v1092_v51 = vmax.f32 %v2085_v4, %v1088_v45 }
 0x4fc   : > { %v1091_v53 = vmax.f32 %v2088_v5, %v1087_v12  ;;  %v1082_v13 = vpop.permute.xlu1 %1081 }
 0x4fd   : > { %1096 = vst.msk [vmem:[%s360_s20 + $0x8] sm:$0xff] %vm957_vm2, %v1092_v51  ;;  %v1090_v14 = vmul.f32 %v1082_v13, %v1052_v48  ;;  %v1080_v15 = vpop.permute.xlu0 %1079 }
 0x4fe   : > { %1095 = vst.msk [vmem:[%s360_s20] sm:$0xff] %vm957_vm2, %v1091_v53  ;;  %v1089_v16 = vmul.f32 %v1080_v15, %v1047_v50 }
 0x4ff   : > { %v1094_v59 = vmax.f32 %v2101_v57, %v1090_v14 }
 0x500   : > { %v1093_v4 = vmax.f32 %v2098_v17, %v1089_v16 }
 0x501   : > { %1098 = vst.msk [vmem:[%s360_s20 + $0x18] sm:$0xff] %vm957_vm2, %v1094_v59 }
 0x502   : > { %1097 = vst.msk [vmem:[%s360_s20 + $0x10] sm:$0xff] %vm957_vm2, %v1093_v4 }
 0x503   : > { %1703 = shalt.err (!%p1700_p9)
}
 0x504   : > { %s1704_s23 = scalar_lea.hbm %s2137_s22, 512  ;;  %s1708_s20 = scalar_lea.hbm %s2191_s7, 1024 }
 0x505   : > { %p1705_p2 = scmp.ne.s32.totalorder %s2137_s22, %s1704_s23  ;;  %p1709_p1 = scmp.lt.u32.totalorder %s2137_s22, %s2191_s7 }
 0x506   : > { %p1710_p11 = scmp.lt.u32.totalorder %s1708_s20, %s1704_s23  ;;  %p1712_p6 = scmp.lt.u32.totalorder %s1704_s23, %s2137_s22 }
 0x507   : > { %p1706_p5 = pnand %p1705_p2, %p1901_p12 }
 0x508   : > { %p1711_p4 = por %p1710_p11, %p1709_p1 }
 0x509   : > { %p1707_p0 = pneg %p1706_p5 }
 0x50a   : > { %p1713_p8 = por %p1712_p6, %p1711_p4 }
 0x50c   : > { %p1714_p10 = pnand %p1713_p8, %p1707_p0 }
 0x50e   : > { %1717 = shalt.err (!%p1714_p10)
}
 0x50f   : > { %s1768_s21 = smov 128   ;;  %s1769_s15 = smov 8  }
 0x510   : > { %1544 = dma.vmem_to_hbm [thread:$0]  (%p1901_p12), %s2130_s12, 512, %s2137_s22, %s1100_s28, %s1768_s21, %s1768_s21, %s1769_s15  }
 0x511 PF: > { %s1128_s16 = sand.u32 1, %s1748_s24   ;;  %p2206_p13 = scmp.ne.s32.totalorder %s2196_s8, 0 }
 0x512   : > { %p2207_p3 = scmp.ge.s32.totalorder %s1760_s27, 2  ;;  %s1129_s14 = scalar_lea.sflag [#allocation4], %s1128_s16 }
 0x514   : > { %p1555_p7 = pnand %p2207_p3, %p2206_p13 }
 0x516   : > { %1743 = dma.done.wait (!%p1555_p7), %s1129_s14, 512  }
 0x517   : > { %1745 = vsyncadd (!%p1555_p7), %s1129_s14, 4294966784  ;;  %p21_p9 = scmp.ge.s32.totalorder %s1866_s13, 4   ;;  %s2208_s24 = smov %s1752_s25 }
 0x518   : > { %s2209_s25 = smov %s1756_s26  ;;  %s2210_s26 = smov %s1897_s18 }
 0x519   : > { %s2211_s27 = smov %s1866_s13  ;;  %23 = sbr.rel (!%p21_p9) target bundleno = 6 (0x6), region = 110 }
 0x520   :  { %1134 = vsyncpa [#allocation3], 1 }
 0x521   :  { %1136 = vsyncpa [#allocation3 + $0x1], 1 }
 0x522   :  { %1137 = vsyncpa [#allocation6], 1 }
 0x523   :  { %1139 = vsyncpa [#allocation6 + $0x1], 1 }
 0x524   :  { %1140 = vsyncpa [#allocation4], 1 }
 0x525   :  { %1142 = vsyncpa [#allocation4 + $0x1], 1 }

</bundles_post_ra>
